<compile_context>
chip_gen: v5e
topology: v5e:2x2
jax: 0.10.0
libtpu: 0.0.40
codegen_flags: <defaults>
</compile_context>

<pallas_src>
import jax
import jax.numpy as jnp
from jax.experimental import pallas as pl
from jax.experimental.pallas import tpu as pltpu

INPUT_SIZE = 9
HIDDEN_SIZE = 36
OUTPUT_SIZE = 9
FPAD = 128  # padded feature width = one lane tile


def ddqn_kernel(x_ref, w_ref, b_ref, o_ref):
    # x_ref: (TB, 9)    f32   -- unpadded states, batch-tiled (36 B/row)
    # w_ref: (128, 384) bf16  -- [W1 | W2 | W3], each zero-padded to 128x128, resident
    # b_ref: (1, 384)   f32   -- [b1 | b2 | b3], zero-padded, resident
    # o_ref: (TB, 9)    f32   -- narrow Q-value output (36 B/row)
    x = x_ref[...].astype(jnp.bfloat16)                       # in-kernel cast, K = 9

    # Layer 1: (TB, 9) @ (9, 128) -- only the 9 meaningful weight rows.
    h1 = jnp.dot(x, w_ref[0:INPUT_SIZE, 0:FPAD],
                 preferred_element_type=jnp.float32)
    h1 = jnp.maximum(h1 + b_ref[:, 0:FPAD], 0.0)              # relu (f32)

    # Layer 2: (TB, 128) @ (128, 128)
    h2 = jnp.dot(h1.astype(jnp.bfloat16), w_ref[:, FPAD:2 * FPAD],
                 preferred_element_type=jnp.float32)
    h2 = jnp.maximum(h2 + b_ref[:, FPAD:2 * FPAD], 0.0)       # relu (f32)

    # Layer 3: (TB, 128) @ (128, 128), tanh, store only the 9 valid lanes.
    h3 = jnp.dot(h2.astype(jnp.bfloat16), w_ref[:, 2 * FPAD:3 * FPAD],
                 preferred_element_type=jnp.float32)
    y = jnp.tanh(h3 + b_ref[:, 2 * FPAD:3 * FPAD])            # tanh (f32)
    o_ref[...] = y[:, 0:OUTPUT_SIZE]


def pack_params(params):
    """(w1,b1,w2,b2,w3,b3) -> (w_packed bf16 (128,384), b_packed f32 (1,384))."""
    w1, b1, w2, b2, w3, b3 = params
    padw = lambda w: jnp.pad(w, ((0, FPAD - w.shape[0]), (0, FPAD - w.shape[1])))
    padb = lambda b: jnp.pad(b, ((0, 0), (0, FPAD - b.shape[1])))
    w_packed = jnp.concatenate([padw(w1), padw(w2), padw(w3)], axis=1).astype(jnp.bfloat16)
    b_packed = jnp.concatenate([padb(b1), padb(b2), padb(b3)], axis=1).astype(jnp.float32)
    return w_packed, b_packed


def ddqn_forward(x, packed_params, *, tb=None):
    """x: (batch, 9) f32 -> (batch, 9) f32 Q-values. packed_params from pack_params()."""
    w_packed, b_packed = packed_params
    batch = x.shape[0]

    if tb is None:
        # Grid-aware tile size: at least ~4 grid steps for large batches (so
        # v7x's 2 TensorCores both get pipelined work via the "parallel" axis),
        # capped at 1024 rows (comfortably inside every generation's default
        # scoped-VMEM budget; pass tb explicitly to go bigger on v6e).
        quarter = ((pl.cdiv(batch, 4) + 7) // 8) * 8
        tb = max(8, min(1024, quarter))
    b_pad = pl.cdiv(batch, tb) * tb

    # Only a cheap batch-row pad in the wrapper; no lane pad, no dtype cast.
    x_p = x if b_pad == batch else jnp.pad(x, ((0, b_pad - batch), (0, 0)))

    out = pl.pallas_call(
        ddqn_kernel,
        out_shape=jax.ShapeDtypeStruct((b_pad, OUTPUT_SIZE), jnp.float32),
        grid=(b_pad // tb,),
        in_specs=[
            pl.BlockSpec((tb, INPUT_SIZE), lambda i: (i, 0)),      # x: batch-tiled, unpadded
            pl.BlockSpec((FPAD, 3 * FPAD), lambda i: (0, 0)),      # weights: resident
            pl.BlockSpec((1, 3 * FPAD), lambda i: (0, 0)),         # biases: resident
        ],
        out_specs=pl.BlockSpec((tb, OUTPUT_SIZE), lambda i: (i, 0)),  # narrow output
        compiler_params=pltpu.CompilerParams(
            dimension_semantics=("parallel",)),                    # v7x: shard over 2 TCs
    )(x_p, w_packed, b_packed)

    # Drop padded rows only if any were added (no-op slice otherwise).
    return out if b_pad == batch else out[:batch]


def init_params(key):
    # Deterministic PyTorch-Linear-like uniform init; weights stored (in, out)
    # so x @ W + b matches torch's x @ W.T + b with W_torch of shape (out, in).
    ks = jax.random.split(key, 6)

    def linear(kw, kb, fan_in, fan_out):
        bound = 1.0 / jnp.sqrt(jnp.float32(fan_in))
        w = jax.random.uniform(kw, (fan_in, fan_out), jnp.float32, -bound, bound)
        b = jax.random.uniform(kb, (1, fan_out), jnp.float32, -bound, bound)
        return w, b

    w1, b1 = linear(ks[0], ks[1], INPUT_SIZE, HIDDEN_SIZE)
    w2, b2 = linear(ks[2], ks[3], HIDDEN_SIZE, HIDDEN_SIZE)
    w3, b3 = linear(ks[4], ks[5], HIDDEN_SIZE, OUTPUT_SIZE)
    return (w1, b1, w2, b2, w3, b3)


def ddqn_ref(x, params):
    # Pure-JAX f32 reference (the PyTorch module's semantics).
    w1, b1, w2, b2, w3, b3 = params
    h1 = jnp.maximum(x @ w1 + b1, 0.0)
    h2 = jnp.maximum(h1 @ w2 + b2, 0.0)
    return jnp.tanh(h2 @ w3 + b3)


def ddqn_ref_bf16(x, params):
    # Reference with the same bf16-input / f32-accumulate matmul policy as the kernel.
    w1, b1, w2, b2, w3, b3 = params
    bf = lambda a: a.astype(jnp.bfloat16)
    h1 = jnp.maximum(jnp.dot(bf(x), bf(w1), preferred_element_type=jnp.float32) + b1, 0.0)
    h2 = jnp.maximum(jnp.dot(bf(h1), bf(w2), preferred_element_type=jnp.float32) + b2, 0.0)
    return jnp.tanh(jnp.dot(bf(h2), bf(w3), preferred_element_type=jnp.float32) + b3)


if __name__ == "__main__":
    key = jax.random.PRNGKey(0)
    k_params, k_x1, k_x2 = jax.random.split(key, 3)

    params = init_params(k_params)
    packed = pack_params(params)

    # Small "action selection" batch (as in the original DDQN usage).
    x_small = jax.random.normal(k_x1, (2, INPUT_SIZE), jnp.float32)
    out_small = jax.block_until_ready(ddqn_forward(x_small, packed))
    assert out_small.shape == (2, OUTPUT_SIZE)
    assert jnp.allclose(out_small, ddqn_ref(x_small, params), atol=3e-2, rtol=3e-2)
    assert jnp.allclose(out_small, ddqn_ref_bf16(x_small, params), atol=5e-3, rtol=5e-3)

    # Larger batch exercising the multi-step pipelined grid (4 x 512-row tiles).
    x_big = jax.random.normal(k_x2, (2048, INPUT_SIZE), jnp.float32)
    out_big = jax.block_until_ready(ddqn_forward(x_big, packed))
    assert out_big.shape == (2048, OUTPUT_SIZE)
    assert jnp.allclose(out_big, ddqn_ref(x_big, params), atol=3e-2, rtol=3e-2)
    assert jnp.allclose(out_big, ddqn_ref_bf16(x_big, params), atol=5e-3, rtol=5e-3)

    print("KERNEL_OK")
</pallas_src>

<mosaic_0001>
module attributes {stable_mosaic.version = 11 : i64} {
  func.func @ddqn_kernel(%arg0: i32, %arg1: memref<8x9xf32, #tpu.memory_space<vmem>>, %arg2: memref<128x384xbf16, #tpu.memory_space<vmem>>, %arg3: memref<1x384xf32, #tpu.memory_space<vmem>>, %arg4: memref<8x9xf32, #tpu.memory_space<vmem>>) attributes {dimension_semantics = [#tpu.dimension_semantics<parallel>], iteration_bounds = array<i64: 1>, scalar_prefetch = 0 : i64, scratch_operands = 0 : i64, tpu.core_type = #tpu.core_type<tc>, window_params = [{transform_indices = @transform_0, window_bounds = array<i64: 8, 9>}, {pipeline_mode = #tpu.pipeline_mode<synchronous>, transform_indices = @transform_1, window_bounds = array<i64: 128, 384>}, {pipeline_mode = #tpu.pipeline_mode<synchronous>, transform_indices = @transform_2, window_bounds = array<i64: 1, 384>}, {transform_indices = @transform_3, window_bounds = array<i64: 8, 9>}]} {
    %c0 = arith.constant 0 : index
    %c0_0 = arith.constant 0 : index
    %0 = vector.load %arg1[%c0, %c0_0] : memref<8x9xf32, #tpu.memory_space<vmem>>, vector<8x9xf32>
    %1 = arith.truncf %0 : vector<8x9xf32> to vector<8x9xbf16>
    %c0_1 = arith.constant 0 : index
    %c0_2 = arith.constant 0 : index
    %2 = vector.load %arg2[%c0_1, %c0_2] : memref<128x384xbf16, #tpu.memory_space<vmem>>, vector<9x128xbf16>
    %cst = arith.constant dense<0.000000e+00> : vector<8x128xf32>
    %3 = tpu.matmul %1, %2, %cst {dimension_numbers = #tpu.dot_dimension_numbers<[1], [0], [0], [1], [0, 0, 1, 1], [], []>} : vector<8x9xbf16>, vector<9x128xbf16>, vector<8x128xf32> -> vector<8x128xf32>
    %c0_3 = arith.constant 0 : index
    %c0_4 = arith.constant 0 : index
    %4 = vector.load %arg3[%c0_3, %c0_4] : memref<1x384xf32, #tpu.memory_space<vmem>>, vector<1x128xf32>
    %5 = vector.broadcast %4 : vector<1x128xf32> to vector<8x128xf32>
    %6 = arith.addf %3, %5 : vector<8x128xf32>
    %cst_5 = arith.constant 0.000000e+00 : f32
    %7 = vector.broadcast %cst_5 : f32 to vector<8x128xf32>
    %8 = arith.maximumf %6, %7 : vector<8x128xf32>
    %9 = arith.truncf %8 : vector<8x128xf32> to vector<8x128xbf16>
    %c0_6 = arith.constant 0 : index
    %c128 = arith.constant 128 : index
    %10 = vector.load %arg2[%c0_6, %c128] : memref<128x384xbf16, #tpu.memory_space<vmem>>, vector<128x128xbf16>
    %cst_7 = arith.constant dense<0.000000e+00> : vector<8x128xf32>
    %11 = tpu.matmul %9, %10, %cst_7 {dimension_numbers = #tpu.dot_dimension_numbers<[1], [0], [0], [1], [0, 0, 1, 1], [], []>} : vector<8x128xbf16>, vector<128x128xbf16>, vector<8x128xf32> -> vector<8x128xf32>
    %c0_8 = arith.constant 0 : index
    %c128_9 = arith.constant 128 : index
    %12 = vector.load %arg3[%c0_8, %c128_9] : memref<1x384xf32, #tpu.memory_space<vmem>>, vector<1x128xf32>
    %13 = vector.broadcast %12 : vector<1x128xf32> to vector<8x128xf32>
    %14 = arith.addf %11, %13 : vector<8x128xf32>
    %cst_10 = arith.constant 0.000000e+00 : f32
    %15 = vector.broadcast %cst_10 : f32 to vector<8x128xf32>
    %16 = arith.maximumf %14, %15 : vector<8x128xf32>
    %17 = arith.truncf %16 : vector<8x128xf32> to vector<8x128xbf16>
    %c0_11 = arith.constant 0 : index
    %c256 = arith.constant 256 : index
    %18 = vector.load %arg2[%c0_11, %c256] : memref<128x384xbf16, #tpu.memory_space<vmem>>, vector<128x128xbf16>
    %cst_12 = arith.constant dense<0.000000e+00> : vector<8x128xf32>
    %19 = tpu.matmul %17, %18, %cst_12 {dimension_numbers = #tpu.dot_dimension_numbers<[1], [0], [0], [1], [0, 0, 1, 1], [], []>} : vector<8x128xbf16>, vector<128x128xbf16>, vector<8x128xf32> -> vector<8x128xf32>
    %c0_13 = arith.constant 0 : index
    %c256_14 = arith.constant 256 : index
    %20 = vector.load %arg3[%c0_13, %c256_14] : memref<1x384xf32, #tpu.memory_space<vmem>>, vector<1x128xf32>
    %21 = vector.broadcast %20 : vector<1x128xf32> to vector<8x128xf32>
    %22 = arith.addf %19, %21 : vector<8x128xf32>
    %23 = math.tanh %22 : vector<8x128xf32>
    %24 = vector.extract_strided_slice %23 {offsets = [0, 0], sizes = [8, 9], strides = [1, 1]} : vector<8x128xf32> to vector<8x9xf32>
    %c0_15 = arith.constant 0 : index
    %c0_16 = arith.constant 0 : index
    %25 = vector.load %arg4[%c0_15, %c0_16] : memref<8x9xf32, #tpu.memory_space<vmem>>, vector<8x9xf32>
    tpu.vector_store %arg4[%c0_15, %c0_16], %24 {strides = array<i32>} : memref<8x9xf32, #tpu.memory_space<vmem>>, vector<8x9xf32>,
    return
  }
  func.func @transform_0(%arg0: i32) -> (i32, i32) {
    %c0_i32 = arith.constant 0 : i32
    %c0_i32_0 = arith.constant 0 : i32
    return %arg0, %c0_i32 : i32, i32
  }
  func.func @transform_1(%arg0: i32) -> (i32, i32) {
    %c0_i32 = arith.constant 0 : i32
    %c0_i32_0 = arith.constant 0 : i32
    %c0_i32_1 = arith.constant 0 : i32
    return %c0_i32, %c0_i32_0 : i32, i32
  }
  func.func @transform_2(%arg0: i32) -> (i32, i32) {
    %c0_i32 = arith.constant 0 : i32
    %c0_i32_0 = arith.constant 0 : i32
    %c0_i32_1 = arith.constant 0 : i32
    return %c0_i32, %c0_i32_0 : i32, i32
  }
  func.func @transform_3(%arg0: i32) -> (i32, i32) {
    %c0_i32 = arith.constant 0 : i32
    %c0_i32_0 = arith.constant 0 : i32
    return %arg0, %c0_i32 : i32, i32
  }
}

</mosaic_0001>

<bundles_post_ra>
// kernel: tpu_custom_call.1
= control target key start
LH: loop header
LB: loop body
LE: loop exit
PB: predicated region body
PF: predicated region fallthrough
CT: control target
= control target key end

     0   :  { %8 = vsyncpa [#allocation3], 0  ;;  %s523_s0 = inlined_call_operand.hbm [shape: f32[8,9], index: 0, kind: input, shape index: {}]   ;;  %s524_s1 = inlined_call_operand.hbm [shape: bf16[128,384], index: 1, kind: input, shape index: {}]   ;;  %s525_s2 = inlined_call_operand.hbm [shape: f32[1,384], index: 2, kind: input, shape index: {}]   ;;  %s526_s3 = inlined_call_operand.hbm [shape: f32[8,9], index: 3, kind: output, shape index: {}]  }
   0x1   :  { %9 = vsyncpa [#allocation6], 0  ;;  %s26_s14 = sshll.u32 %s524_s1, 4  ;;  %s27_s14 = int_to_ptr.hbm [resolvable:$true] %s26_s14 }
   0x2   :  { %10 = vsyncpa [#allocation4], 0  ;;  %s482_s15 = smov [#allocation5]   ;;  %s16_s19 = sshll.u32 %s523_s0, 4  ;;  %s17_s19 = int_to_ptr.hbm [resolvable:$true] %s16_s19 }
   0x3   :  { %s28_s16 = sshll.u32 %s482_s15, 4  ;;  %s483_s20 = smov 192   ;;  %s29_s16 = int_to_ptr.vmem [resolvable:$true] %s28_s16 }
   0x4   :  { %s484_s21 = smov 12   ;;  %s485_s22 = smov [#allocation2]  }
   0x5   :  { %34 = dma.hbm_to_vmem [thread:$0]  %s27_s14, 3072, %s29_s16, [#allocation6], %s483_s20, %s483_s20, %s484_s21  }
   0x6   :  { %s18_s23 = sshll.u32 %s485_s22, 4  ;;  %s40_s26 = sshll.u32 %s525_s2, 4  ;;  %s19_s23 = int_to_ptr.vmem [resolvable:$true] %s18_s23  ;;  %s41_s26 = int_to_ptr.hbm [resolvable:$true] %s40_s26 }
   0x7   :  { %21 = dma.hbm_to_vmem [thread:$0]  %s17_s19, 128, %s19_s23, [#allocation3]  }
   0x8   :  { %s486_s1 = smov [#allocation7]  }
   0x9   :  { %s42_s27 = sshll.u32 %s486_s1, 4  ;;  %s43_s27 = int_to_ptr.vmem [resolvable:$true] %s42_s27 }
   0xa   :  { %45 = dma.hbm_to_vmem [thread:$0]  %s41_s26, 48, %s43_s27, [#allocation6]  }
   0xb   :  { %476 = dma.done.wait [#allocation3], 128  }
   0xc   :  { %477 = vsyncadd [#allocation3], 4294967168 }
   0xd   :  { %478 = dma.done.wait [#allocation6], 3120  }
   0xe   :  { %479 = vsyncadd [#allocation6], 4294964176  ;;  %vm76_vm0 = vcmask 1043456   ;;  %vm77_vm1 = vcmask 1044480   ;;  %v487_v0 = vmov 65535   ;;  %v59_v5 = vld [vmem:[#allocation2] sm:$0xff] }
   0xf   :  { %v78_v1 = vsel %vm76_vm0, 4294967295, %v487_v0  ;;  %v284_v2 = vld [vmem:[#allocation5] sm:$0xf]  ;;  %v351_v3 = vld [vmem:[#allocation5 + $0x8] sm:$0x10]  ;;  %v60_v13 = vpack.c.bf16 %v59_v5, %v59_v5  ;;  %vm72_vm2 = vcmask 72704  }
  0x10   :  { %v79_v4 = vsel %vm77_vm1, %v78_v1, 0  ;;  %v285_v6 = vor.u32 %v351_v3, %v284_v2  ;;  %v317_v7 = vld [vmem:[#allocation5 + $0xac] sm:$0xf]  ;;  %v359_v8 = vld [vmem:[#allocation5 + $0xb4] sm:$0xf0]  ;;  %s488_s0 = smov [#allocation8]  }
  0x11   :  { %v313_v9 = vld [vmem:[#allocation5 + $0x94] sm:$0xf]  ;;  %v318_v10 = vor.u32 %v359_v8, %v317_v7  ;;  %v358_v11 = vld [vmem:[#allocation5 + $0x9c] sm:$0xf0]  ;;  %v309_v15 = vld [vmem:[#allocation5 + $0x7c] sm:$0xf] }
  0x12   :  { %v81_v12 = vand.u32 %v285_v6, %v79_v4  ;;  %v314_v14 = vor.u32 %v358_v11, %v313_v9  ;;  %v357_v16 = vld [vmem:[#allocation5 + $0x84] sm:$0xf0]  ;;  %v305_v18 = vld [vmem:[#allocation5 + $0x64] sm:$0xf]  ;;  %v356_v19 = vld [vmem:[#allocation5 + $0x6c] sm:$0xf0] }
  0x13   :  { %166 = vmatpush.bf16.msra.mxu1 %v318_v10  ;;  %v310_v17 = vor.u32 %v357_v16, %v309_v15  ;;  %v306_v20 = vor.u32 %v356_v19, %v305_v18  ;;  %v301_v21 = vld [vmem:[#allocation5 + $0x4c] sm:$0xf]  ;;  %v355_v22 = vld [vmem:[#allocation5 + $0x54] sm:$0xf0]  ;;  %v297_v24 = vld [vmem:[#allocation5 + $0x34] sm:$0xf] }
  0x14   :  { %90 = vmatpush.bf16.msra.mxu0 %v81_v12  ;;  %v302_v23 = vor.u32 %v355_v22, %v301_v21  ;;  %v354_v25 = vld [vmem:[#allocation5 + $0x3c] sm:$0xf0]  ;;  %v293_v27 = vld [vmem:[#allocation5 + $0x1c] sm:$0xf]  ;;  %v353_v28 = vld [vmem:[#allocation5 + $0x24] sm:$0xf0] }
  0x15   :  { %v298_v26 = vor.u32 %v354_v25, %v297_v24  ;;  %v294_v29 = vor.u32 %v353_v28, %v293_v27  ;;  %v289_v30 = vld [vmem:[#allocation5 + $0x4] sm:$0xf]  ;;  %v352_v31 = vld [vmem:[#allocation5 + $0xc] sm:$0xf0]  ;;  %v367_v34 = vld [vmem:[#allocation5 + $0xb8] sm:$0xf0] }
  0x16   :  { %v290_v32 = vor.u32 %v352_v31, %v289_v30  ;;  %v349_v33 = vld [vmem:[#allocation5 + $0xb0] sm:$0xf]  ;;  %v345_v35 = vld [vmem:[#allocation5 + $0x98] sm:$0xf]  ;;  %v366_v37 = vld [vmem:[#allocation5 + $0xa0] sm:$0xf0] }
  0x17   :  { %286 = vmatmul.msk.bf16.vlgmr.msra.gmra.mxu0 %vm72_vm2, %v60_v13  ;;  %167 = vmatpush.bf16.msra.mxu1 %v314_v14  ;;  %v350_v36 = vor.u32 %v367_v34, %v349_v33  ;;  %v346_v38 = vor.u32 %v366_v37, %v345_v35  ;;  %v341_v39 = vld [vmem:[#allocation5 + $0x80] sm:$0xf]  ;;  %v365_v40 = vld [vmem:[#allocation5 + $0x88] sm:$0xf0]  ;;  %v337_v42 = vld [vmem:[#allocation5 + $0x68] sm:$0xf] }
  0x18   :  { %v342_v41 = vor.u32 %v365_v40, %v341_v39  ;;  %v364_v43 = vld [vmem:[#allocation5 + $0x70] sm:$0xf0]  ;;  %v333_v45 = vld [vmem:[#allocation5 + $0x50] sm:$0xf]  ;;  %v363_v46 = vld [vmem:[#allocation5 + $0x58] sm:$0xf0] }
  0x19   :  { %249 = vmatpush.bf16.msra.mxu2 %v350_v36  ;;  %v338_v44 = vor.u32 %v364_v43, %v337_v42  ;;  %v334_v47 = vor.u32 %v363_v46, %v333_v45  ;;  %v329_v48 = vld [vmem:[#allocation5 + $0x38] sm:$0xf]  ;;  %v362_v49 = vld [vmem:[#allocation5 + $0x40] sm:$0xf0]  ;;  %v375_v51 = vld [vmem:[#allocation7] ss:$0 sm:$0xff] }
  0x1a   :  { %v330_v50 = vor.u32 %v362_v49, %v329_v48  ;;  %v325_v57 = vld [vmem:[#allocation5 + $0x20] sm:$0xf]  ;;  %v361_v58 = vld [vmem:[#allocation5 + $0x28] sm:$0xf0]  ;;  %v321_v60 = vld [vmem:[#allocation5 + $0x8] sm:$0xf] }
  0x1b   :  { %168 = vmatpush.bf16.msra.mxu1 %v310_v17  ;;  %v326_v59 = vor.u32 %v361_v58, %v325_v57  ;;  %v360_v61 = vld [vmem:[#allocation5 + $0x10] sm:$0xf0]  ;;  %v376_v63 = vld [vmem:[#allocation7 + $0x1] ss:$0 sm:$0xff]  ;;  %v377_v5 = vld [vmem:[#allocation7 + $0x2] ss:$0 sm:$0xff] }
  0x1c   :  { %v322_v62 = vor.u32 %v360_v61, %v321_v60  ;;  %s269_s2 = sshll.u32 %s488_s0, 4  ;;  %s271_s30 = sshll.u32 %s526_s3, 4  ;;  %s270_s2 = int_to_ptr.vmem [resolvable:$true] %s269_s2  ;;  %s272_s30 = int_to_ptr.hbm [resolvable:$true] %s271_s30 }
  0x1d   :  { %250 = vmatpush.bf16.msra.mxu2 %v346_v38 }
  0x1f   :  { %169 = vmatpush.bf16.msra.mxu1 %v306_v20 }
  0x21   :  { %251 = vmatpush.bf16.msra.mxu2 %v342_v41 }
  0x23   :  { %170 = vmatpush.bf16.msra.mxu1 %v302_v23 }
  0x25   :  { %252 = vmatpush.bf16.msra.mxu2 %v338_v44 }
  0x27   :  { %171 = vmatpush.bf16.msra.mxu1 %v298_v26 }
  0x29   :  { %253 = vmatpush.bf16.msra.mxu2 %v334_v47 }
  0x2b   :  { %172 = vmatpush.bf16.msra.mxu1 %v294_v29 }
  0x2d   :  { %254 = vmatpush.bf16.msra.mxu2 %v330_v50 }
  0x2f   :  { %173 = vmatpush.bf16.msra.mxu1 %v290_v32 }
  0x31   :  { %255 = vmatpush.bf16.msra.mxu2 %v326_v59 }
  0x35   :  { %256 = vmatpush.bf16.msra.mxu2 %v322_v62 }
  0x94   :  { %v92_v52 = vpop.f32.mrf.mxu0 }
  0x95   :  { %v93_v53 = vadd.f32 %v375_v51, %v92_v52 }
  0x97   :  { %v96_v54 = vmax.f32 %v93_v53, 0.0 }
  0x99   :  { %v97_v55 = vpack.c.bf16 %v96_v54, %v96_v54 }
  0x9b   :  { %174 = vmatmul.bf16.vlgmr.msra.gmra.mxu1 %v97_v55 }
  0x9c   :  { %v94_v56 = vpop.f32.mrf.mxu0 }
 0x118   :  { %v175_v0 = vpop.f32.mrf.mxu1 }
 0x119   :  { %v176_v1 = vadd.f32 %v376_v63, %v175_v0 }
 0x11b   :  { %v179_v2 = vmax.f32 %v176_v1, 0.0 }
 0x11d   :  { %v180_v3 = vpack.c.bf16 %v179_v2, %v179_v2 }
 0x11f   :  { %257 = vmatmul.bf16.vlgmr.msra.gmra.mxu2 %v180_v3 }
 0x120   :  { %v177_v4 = vpop.f32.mrf.mxu1 }
 0x1a2   :  { %v258_v6 = vpop.f32.mrf.mxu2 }
 0x1a3   :  { %v259_v7 = vadd.f32 %v377_v5, %v258_v6 }
 0x1a5   :  { %378 = vtanh.f32 %v259_v7 }
 0x1aa   :  { %v260_v8 = vpop.f32.mrf.mxu2 }
 0x1ab   :  { %v379_v9 = vpop.eup %378 }
 0x1ac   :  { %263 = vst.msk [vmem:[#allocation8] sm:$0xff] %vm72_vm2, %v379_v9 }
 0x1ad   :  { %274 = dma.vmem_to_hbm [thread:$0]  %s270_s2, 128, %s272_s30, [#allocation4]  }
 0x1ae   :  { %480 = dma.done.wait [#allocation4], 128  }
 0x1af   :  { %481 = vsyncadd [#allocation4], 4294967168 }
 0x1b0   :  { %279 = vsyncpa [#allocation3], 1 }
 0x1b1   :  { %280 = vsyncpa [#allocation6], 1 }
 0x1b2   :  { %281 = vsyncpa [#allocation4], 1 }

</bundles_post_ra>
